<compile_context>
chip_gen: v5e
topology: v5e:2x2
jax: 0.10.0
libtpu: 0.0.40
codegen_flags: <defaults>
</compile_context>

<pallas_src>
import jax
import jax.numpy as jnp
from jax.experimental import pallas as pl
from jax.experimental.pallas import tpu as pltpu


def _round_up(x, m):
    return ((x + m - 1) // m) * m


def cov1d_kernel(
    x_ref,       # (10, TILE_B, 22) bf16  input, L-major
    w1_ref,      # (22, 32)   bf16        conv1 weight, (in, out)
    b1_ref,      # (1, 32)    f32
    w2_ref,      # (32, 64)   bf16        conv2 weight, (in, out)
    b2_ref,      # (1, 64)    f32
    wf1_ref,     # (10, 64, 128) bf16     fc1 weight, per-position (in, out)
    bf1_ref,     # (1, 128)   f32
    wf2_ref,     # (128, 64)  bf16        fc2 weight, (in, out)
    bf2_ref,     # (1, 64)    f32
    wf3_ref,     # (1, 64)    f32         fc3 weight (VPU multiply + reduce)
    bf3_ref,     # (1, 1)     f32
    out_ref,     # (TILE_B, 1) f32
):
    L, tile_b, c_in = x_ref.shape

    # Free leading-dim collapse: (10, TILE_B, 22) -> (10*TILE_B, 22).
    x2 = x_ref[...].reshape(L * tile_b, c_in)

    # conv1 (k=1): one big (10*TILE_B, 22) @ (22, 32) matmul + bias + ReLU.
    h1 = jnp.dot(x2, w1_ref[...], preferred_element_type=jnp.float32)
    h1 = jnp.maximum(h1 + b1_ref[...], 0.0)               # f32

    # conv2 (k=1): (10*TILE_B, 32) @ (32, 64) + bias + ReLU.
    h2 = jnp.dot(h1.astype(jnp.bfloat16), w2_ref[...],
                 preferred_element_type=jnp.float32)
    h2 = jnp.maximum(h2 + b2_ref[...], 0.0)                # f32

    # Free leading-dim split back to (10, TILE_B, 64); h2b[l, b, c] is the
    # conv2 output for (batch b, channel c, position l).
    h2b = h2.astype(jnp.bfloat16).reshape(L, tile_b, h2.shape[-1])

    # fc1 as an accumulated contraction over L — no lane relayout, 10 small
    # MXU matmuls of (TILE_B, 64) @ (64, 128) with f32 accumulation.
    wf1 = wf1_ref[...]                                     # (10, 64, 128) bf16
    n_hidden = wf1.shape[-1]
    f1 = jnp.zeros((tile_b, n_hidden), jnp.float32)
    for l in range(L):
        f1 = f1 + jnp.dot(h2b[l], wf1[l], preferred_element_type=jnp.float32)
    f1 = jnp.maximum(f1 + bf1_ref[...], 0.0)               # (TILE_B, 128)

    # fc2 + ReLU (dropout = identity at inference).
    f2 = jnp.dot(f1.astype(jnp.bfloat16), wf2_ref[...],
                 preferred_element_type=jnp.float32)
    f2 = jnp.maximum(f2 + bf2_ref[...], 0.0)               # (TILE_B, 64)

    # fc3 (N=1): VPU multiply + lane reduction instead of an MXU matmul.
    out = jnp.sum(f2 * wf3_ref[...], axis=-1, keepdims=True) + bf3_ref[...]
    out_ref[...] = out.astype(out_ref.dtype)               # (TILE_B, 1)


def prepare_params(params):
    """One-time host-side repack of PyTorch-layout params for the kernel."""
    (w1, b1, w2, b2, wf1, bf1, wf2, bf2, wf3, bf3) = params
    bf16 = jnp.bfloat16
    # (out, in) -> (in, out); MXU operands cast to bf16.
    w1_t = w1.T.astype(bf16)                                   # (22, 32)
    w2_t = w2.T.astype(bf16)                                   # (32, 64)
    # fc1: PyTorch flatten index is c*10 + l.  Prepack as (L, C, O) so that
    # wf1_t[l, c, o] == wf1[o, c*10 + l]; the kernel then accumulates
    # f1 += h2[l] @ wf1_t[l] over l.
    wf1_t = (wf1.reshape(128, 64, 10)
                .transpose(2, 1, 0)
                .astype(bf16))                                 # (10, 64, 128)
    wf2_t = wf2.T.astype(bf16)                                 # (128, 64)
    # Biases and the fc3 row stay f32 (VPU work).
    return (w1_t, b1, w2_t, b2, wf1_t, bf1, wf2_t, bf2, wf3, bf3)


def _const_spec(p):
    nd = p.ndim
    return pl.BlockSpec(p.shape, lambda i, nd=nd: (0,) * nd)


@jax.jit
def cov1d_forward(x, prepped_params):
    B, L, C_in = x.shape

    # Balanced batch tiles: cap at 1024 rows (v7x VMEM-safe, amortizes per-step
    # overhead on v5e/v6e), force >= 2 grid steps when B is large enough so
    # the "parallel" axis shards across the 2 TCs on v7x, round tiles to 16
    # (bf16 sublane tile) and pad B minimally.
    CAP = 1024
    n_tiles = pl.cdiv(B, CAP)
    if B > 16:
        n_tiles = max(n_tiles, 2)
    TILE_B = _round_up(pl.cdiv(B, n_tiles), 16)
    B_pad = TILE_B * n_tiles

    # Host-side (jitted) layout prep: bf16 cast, (B, L, C) -> (L, B, C), pad B.
    x_lbc = jnp.transpose(x.astype(jnp.bfloat16), (1, 0, 2))  # (10, B, 22)
    if B_pad != B:
        x_lbc = jnp.pad(x_lbc, ((0, 0), (0, B_pad - B), (0, 0)))

    grid = (n_tiles,)

    x_spec = pl.BlockSpec((L, TILE_B, C_in), lambda i: (0, i, 0))
    w_specs = [_const_spec(p) for p in prepped_params]
    out_spec = pl.BlockSpec((TILE_B, 1), lambda i: (i, 0))

    out = pl.pallas_call(
        cov1d_kernel,
        out_shape=jax.ShapeDtypeStruct((B_pad, 1), jnp.float32),
        grid=grid,
        in_specs=[x_spec] + w_specs,
        out_specs=out_spec,
        compiler_params=pltpu.CompilerParams(
            dimension_semantics=("parallel",),
            vmem_limit_bytes=48 * 1024 * 1024,
        ),
    )(x_lbc, *prepped_params)

    return out[:B]


def init_params(key):
    """Deterministic parameter init matching the PyTorch module's shapes."""
    ks = jax.random.split(key, 10)

    def uniform(k, shape, fan_in):
        bound = 1.0 / jnp.sqrt(float(fan_in))
        return jax.random.uniform(k, shape, jnp.float32, -bound, bound)

    # conv1: Conv1d(22 -> 32, k=1)  weight (32, 22, 1) -> (32, 22)
    w1 = uniform(ks[0], (32, 22), 22)
    b1 = uniform(ks[1], (1, 32), 22)
    # conv2: Conv1d(32 -> 64, k=1)
    w2 = uniform(ks[2], (64, 32), 32)
    b2 = uniform(ks[3], (1, 64), 32)
    # fc1: Linear(640 -> 128)
    wf1 = uniform(ks[4], (128, 640), 640)
    bf1 = uniform(ks[5], (1, 128), 640)
    # fc2: Linear(128 -> 64)
    wf2 = uniform(ks[6], (64, 128), 128)
    bf2 = uniform(ks[7], (1, 64), 128)
    # fc3: Linear(64 -> 1)
    wf3 = uniform(ks[8], (1, 64), 64)
    bf3 = uniform(ks[9], (1, 1), 64)
    return (w1, b1, w2, b2, wf1, bf1, wf2, bf2, wf3, bf3)


def cov1d_reference(x, params):
    """Pure-JAX f32 reference of the PyTorch forward (eval mode)."""
    (w1, b1, w2, b2, wf1, bf1, wf2, bf2, wf3, bf3) = params
    h1 = jax.nn.relu(jnp.einsum("blc,oc->blo", x, w1) + b1[None, :, :])
    h2 = jax.nn.relu(jnp.einsum("blc,oc->blo", h1, w2) + b2[None, :, :])
    B = x.shape[0]
    flat = jnp.transpose(h2, (0, 2, 1)).reshape(B, -1)   # PyTorch view(B, -1)
    f1 = jax.nn.relu(flat @ wf1.T + bf1)
    f2 = jax.nn.relu(f1 @ wf2.T + bf2)
    return f2 @ wf3.T + bf3


if __name__ == "__main__":
    key = jax.random.PRNGKey(0)
    k_x, k_p = jax.random.split(key)

    # Input implied by the module: fc1 expects 64 * 10 features -> L = 10,
    # conv1 expects 22 input channels -> x is (B, 10, 22).
    B = 2
    x = jax.random.normal(k_x, (B, 10, 22), jnp.float32)
    params = init_params(k_p)
    prepped = prepare_params(params)

    out = cov1d_forward(x, prepped)
    out = jax.block_until_ready(out)

    ref = cov1d_reference(x, params)
    assert out.shape == (B, 1), out.shape
    # bf16 MXU operands with f32 accumulation -> slightly looser tolerance.
    assert jnp.allclose(out, ref, atol=3e-2, rtol=3e-2), (out, ref)

    print("KERNEL_OK")
</pallas_src>

<mosaic_0001>
module attributes {stable_mosaic.version = 11 : i64} {
  func.func @cov1d_kernel(%arg0: i32, %arg1: memref<10x16x22xbf16, #tpu.memory_space<vmem>>, %arg2: memref<22x32xbf16, #tpu.memory_space<vmem>>, %arg3: memref<1x32xf32, #tpu.memory_space<vmem>>, %arg4: memref<32x64xbf16, #tpu.memory_space<vmem>>, %arg5: memref<1x64xf32, #tpu.memory_space<vmem>>, %arg6: memref<10x64x128xbf16, #tpu.memory_space<vmem>>, %arg7: memref<1x128xf32, #tpu.memory_space<vmem>>, %arg8: memref<128x64xbf16, #tpu.memory_space<vmem>>, %arg9: memref<1x64xf32, #tpu.memory_space<vmem>>, %arg10: memref<1x64xf32, #tpu.memory_space<vmem>>, %arg11: memref<1x1xf32, #tpu.memory_space<vmem>>, %arg12: memref<16x1xf32, #tpu.memory_space<vmem>>) attributes {dimension_semantics = [#tpu.dimension_semantics<parallel>], iteration_bounds = array<i64: 1>, scalar_prefetch = 0 : i64, scratch_operands = 0 : i64, tpu.core_type = #tpu.core_type<tc>, window_params = [{transform_indices = @transform_0, window_bounds = array<i64: 10, 16, 22>}, {pipeline_mode = #tpu.pipeline_mode<synchronous>, transform_indices = @transform_1, window_bounds = array<i64: 22, 32>}, {pipeline_mode = #tpu.pipeline_mode<synchronous>, transform_indices = @transform_2, window_bounds = array<i64: 1, 32>}, {pipeline_mode = #tpu.pipeline_mode<synchronous>, transform_indices = @transform_3, window_bounds = array<i64: 32, 64>}, {pipeline_mode = #tpu.pipeline_mode<synchronous>, transform_indices = @transform_4, window_bounds = array<i64: 1, 64>}, {pipeline_mode = #tpu.pipeline_mode<synchronous>, transform_indices = @transform_5, window_bounds = array<i64: 10, 64, 128>}, {pipeline_mode = #tpu.pipeline_mode<synchronous>, transform_indices = @transform_6, window_bounds = array<i64: 1, 128>}, {pipeline_mode = #tpu.pipeline_mode<synchronous>, transform_indices = @transform_7, window_bounds = array<i64: 128, 64>}, {pipeline_mode = #tpu.pipeline_mode<synchronous>, transform_indices = @transform_8, window_bounds = array<i64: 1, 64>}, {pipeline_mode = #tpu.pipeline_mode<synchronous>, transform_indices = @transform_9, window_bounds = array<i64: 1, 64>}, {pipeline_mode = #tpu.pipeline_mode<synchronous>, transform_indices = @transform_10, window_bounds = array<i64: 1, 1>}, {transform_indices = @transform_11, window_bounds = array<i64: 16, 1>}]} {
    %c0 = arith.constant 0 : index
    %c0_0 = arith.constant 0 : index
    %c0_1 = arith.constant 0 : index
    %0 = vector.load %arg1[%c0, %c0_0, %c0_1] : memref<10x16x22xbf16, #tpu.memory_space<vmem>>, vector<10x16x22xbf16>
    %1 = vector.shape_cast %0 : vector<10x16x22xbf16> to vector<160x22xbf16>
    %c0_2 = arith.constant 0 : index
    %c0_3 = arith.constant 0 : index
    %2 = vector.load %arg2[%c0_2, %c0_3] : memref<22x32xbf16, #tpu.memory_space<vmem>>, vector<22x32xbf16>
    %cst = arith.constant dense<0.000000e+00> : vector<160x32xf32>
    %3 = tpu.matmul %1, %2, %cst {dimension_numbers = #tpu.dot_dimension_numbers<[1], [0], [0], [1], [0, 0, 1, 1], [], []>} : vector<160x22xbf16>, vector<22x32xbf16>, vector<160x32xf32> -> vector<160x32xf32>
    %c0_4 = arith.constant 0 : index
    %c0_5 = arith.constant 0 : index
    %4 = vector.load %arg3[%c0_4, %c0_5] : memref<1x32xf32, #tpu.memory_space<vmem>>, vector<1x32xf32>
    %5 = vector.broadcast %4 : vector<1x32xf32> to vector<160x32xf32>
    %6 = arith.addf %3, %5 : vector<160x32xf32>
    %cst_6 = arith.constant 0.000000e+00 : f32
    %7 = vector.broadcast %cst_6 : f32 to vector<160x32xf32>
    %8 = arith.maximumf %6, %7 : vector<160x32xf32>
    %9 = arith.truncf %8 : vector<160x32xf32> to vector<160x32xbf16>
    %c0_7 = arith.constant 0 : index
    %c0_8 = arith.constant 0 : index
    %10 = vector.load %arg4[%c0_7, %c0_8] : memref<32x64xbf16, #tpu.memory_space<vmem>>, vector<32x64xbf16>
    %cst_9 = arith.constant dense<0.000000e+00> : vector<160x64xf32>
    %11 = tpu.matmul %9, %10, %cst_9 {dimension_numbers = #tpu.dot_dimension_numbers<[1], [0], [0], [1], [0, 0, 1, 1], [], []>} : vector<160x32xbf16>, vector<32x64xbf16>, vector<160x64xf32> -> vector<160x64xf32>
    %c0_10 = arith.constant 0 : index
    %c0_11 = arith.constant 0 : index
    %12 = vector.load %arg5[%c0_10, %c0_11] : memref<1x64xf32, #tpu.memory_space<vmem>>, vector<1x64xf32>
    %13 = vector.broadcast %12 : vector<1x64xf32> to vector<160x64xf32>
    %14 = arith.addf %11, %13 : vector<160x64xf32>
    %cst_12 = arith.constant 0.000000e+00 : f32
    %15 = vector.broadcast %cst_12 : f32 to vector<160x64xf32>
    %16 = arith.maximumf %14, %15 : vector<160x64xf32>
    %17 = arith.truncf %16 : vector<160x64xf32> to vector<160x64xbf16>
    %18 = vector.shape_cast %17 : vector<160x64xbf16> to vector<10x16x64xbf16>
    %c0_13 = arith.constant 0 : index
    %c0_14 = arith.constant 0 : index
    %c0_15 = arith.constant 0 : index
    %19 = vector.load %arg6[%c0_13, %c0_14, %c0_15] : memref<10x64x128xbf16, #tpu.memory_space<vmem>>, vector<10x64x128xbf16>
    %cst_16 = arith.constant 0.000000e+00 : f32
    %20 = vector.broadcast %cst_16 : f32 to vector<16x128xf32>
    %21 = vector.extract_strided_slice %18 {offsets = [0, 0, 0], sizes = [1, 16, 64], strides = [1, 1, 1]} : vector<10x16x64xbf16> to vector<1x16x64xbf16>
    %22 = vector.shape_cast %21 : vector<1x16x64xbf16> to vector<16x64xbf16>
    %23 = vector.extract_strided_slice %19 {offsets = [0, 0, 0], sizes = [1, 64, 128], strides = [1, 1, 1]} : vector<10x64x128xbf16> to vector<1x64x128xbf16>
    %24 = vector.shape_cast %23 : vector<1x64x128xbf16> to vector<64x128xbf16>
    %cst_17 = arith.constant dense<0.000000e+00> : vector<16x128xf32>
    %25 = tpu.matmul %22, %24, %cst_17 {dimension_numbers = #tpu.dot_dimension_numbers<[1], [0], [0], [1], [0, 0, 1, 1], [], []>} : vector<16x64xbf16>, vector<64x128xbf16>, vector<16x128xf32> -> vector<16x128xf32>
    %26 = arith.addf %20, %25 : vector<16x128xf32>
    %27 = vector.extract_strided_slice %18 {offsets = [1, 0, 0], sizes = [1, 16, 64], strides = [1, 1, 1]} : vector<10x16x64xbf16> to vector<1x16x64xbf16>
    %28 = vector.shape_cast %27 : vector<1x16x64xbf16> to vector<16x64xbf16>
    %29 = vector.extract_strided_slice %19 {offsets = [1, 0, 0], sizes = [1, 64, 128], strides = [1, 1, 1]} : vector<10x64x128xbf16> to vector<1x64x128xbf16>
    %30 = vector.shape_cast %29 : vector<1x64x128xbf16> to vector<64x128xbf16>
    %cst_18 = arith.constant dense<0.000000e+00> : vector<16x128xf32>
    %31 = tpu.matmul %28, %30, %cst_18 {dimension_numbers = #tpu.dot_dimension_numbers<[1], [0], [0], [1], [0, 0, 1, 1], [], []>} : vector<16x64xbf16>, vector<64x128xbf16>, vector<16x128xf32> -> vector<16x128xf32>
    %32 = arith.addf %26, %31 : vector<16x128xf32>
    %33 = vector.extract_strided_slice %18 {offsets = [2, 0, 0], sizes = [1, 16, 64], strides = [1, 1, 1]} : vector<10x16x64xbf16> to vector<1x16x64xbf16>
    %34 = vector.shape_cast %33 : vector<1x16x64xbf16> to vector<16x64xbf16>
    %35 = vector.extract_strided_slice %19 {offsets = [2, 0, 0], sizes = [1, 64, 128], strides = [1, 1, 1]} : vector<10x64x128xbf16> to vector<1x64x128xbf16>
    %36 = vector.shape_cast %35 : vector<1x64x128xbf16> to vector<64x128xbf16>
    %cst_19 = arith.constant dense<0.000000e+00> : vector<16x128xf32>
    %37 = tpu.matmul %34, %36, %cst_19 {dimension_numbers = #tpu.dot_dimension_numbers<[1], [0], [0], [1], [0, 0, 1, 1], [], []>} : vector<16x64xbf16>, vector<64x128xbf16>, vector<16x128xf32> -> vector<16x128xf32>
    %38 = arith.addf %32, %37 : vector<16x128xf32>
    %39 = vector.extract_strided_slice %18 {offsets = [3, 0, 0], sizes = [1, 16, 64], strides = [1, 1, 1]} : vector<10x16x64xbf16> to vector<1x16x64xbf16>
    %40 = vector.shape_cast %39 : vector<1x16x64xbf16> to vector<16x64xbf16>
    %41 = vector.extract_strided_slice %19 {offsets = [3, 0, 0], sizes = [1, 64, 128], strides = [1, 1, 1]} : vector<10x64x128xbf16> to vector<1x64x128xbf16>
    %42 = vector.shape_cast %41 : vector<1x64x128xbf16> to vector<64x128xbf16>
    %cst_20 = arith.constant dense<0.000000e+00> : vector<16x128xf32>
    %43 = tpu.matmul %40, %42, %cst_20 {dimension_numbers = #tpu.dot_dimension_numbers<[1], [0], [0], [1], [0, 0, 1, 1], [], []>} : vector<16x64xbf16>, vector<64x128xbf16>, vector<16x128xf32> -> vector<16x128xf32>
    %44 = arith.addf %38, %43 : vector<16x128xf32>
    %45 = vector.extract_strided_slice %18 {offsets = [4, 0, 0], sizes = [1, 16, 64], strides = [1, 1, 1]} : vector<10x16x64xbf16> to vector<1x16x64xbf16>
    %46 = vector.shape_cast %45 : vector<1x16x64xbf16> to vector<16x64xbf16>
    %47 = vector.extract_strided_slice %19 {offsets = [4, 0, 0], sizes = [1, 64, 128], strides = [1, 1, 1]} : vector<10x64x128xbf16> to vector<1x64x128xbf16>
    %48 = vector.shape_cast %47 : vector<1x64x128xbf16> to vector<64x128xbf16>
    %cst_21 = arith.constant dense<0.000000e+00> : vector<16x128xf32>
    %49 = tpu.matmul %46, %48, %cst_21 {dimension_numbers = #tpu.dot_dimension_numbers<[1], [0], [0], [1], [0, 0, 1, 1], [], []>} : vector<16x64xbf16>, vector<64x128xbf16>, vector<16x128xf32> -> vector<16x128xf32>
    %50 = arith.addf %44, %49 : vector<16x128xf32>
    %51 = vector.extract_strided_slice %18 {offsets = [5, 0, 0], sizes = [1, 16, 64], strides = [1, 1, 1]} : vector<10x16x64xbf16> to vector<1x16x64xbf16>
    %52 = vector.shape_cast %51 : vector<1x16x64xbf16> to vector<16x64xbf16>
    %53 = vector.extract_strided_slice %19 {offsets = [5, 0, 0], sizes = [1, 64, 128], strides = [1, 1, 1]} : vector<10x64x128xbf16> to vector<1x64x128xbf16>
    %54 = vector.shape_cast %53 : vector<1x64x128xbf16> to vector<64x128xbf16>
    %cst_22 = arith.constant dense<0.000000e+00> : vector<16x128xf32>
    %55 = tpu.matmul %52, %54, %cst_22 {dimension_numbers = #tpu.dot_dimension_numbers<[1], [0], [0], [1], [0, 0, 1, 1], [], []>} : vector<16x64xbf16>, vector<64x128xbf16>, vector<16x128xf32> -> vector<16x128xf32>
    %56 = arith.addf %50, %55 : vector<16x128xf32>
    %57 = vector.extract_strided_slice %18 {offsets = [6, 0, 0], sizes = [1, 16, 64], strides = [1, 1, 1]} : vector<10x16x64xbf16> to vector<1x16x64xbf16>
    %58 = vector.shape_cast %57 : vector<1x16x64xbf16> to vector<16x64xbf16>
    %59 = vector.extract_strided_slice %19 {offsets = [6, 0, 0], sizes = [1, 64, 128], strides = [1, 1, 1]} : vector<10x64x128xbf16> to vector<1x64x128xbf16>
    %60 = vector.shape_cast %59 : vector<1x64x128xbf16> to vector<64x128xbf16>
    %cst_23 = arith.constant dense<0.000000e+00> : vector<16x128xf32>
    %61 = tpu.matmul %58, %60, %cst_23 {dimension_numbers = #tpu.dot_dimension_numbers<[1], [0], [0], [1], [0, 0, 1, 1], [], []>} : vector<16x64xbf16>, vector<64x128xbf16>, vector<16x128xf32> -> vector<16x128xf32>
    %62 = arith.addf %56, %61 : vector<16x128xf32>
    %63 = vector.extract_strided_slice %18 {offsets = [7, 0, 0], sizes = [1, 16, 64], strides = [1, 1, 1]} : vector<10x16x64xbf16> to vector<1x16x64xbf16>
    %64 = vector.shape_cast %63 : vector<1x16x64xbf16> to vector<16x64xbf16>
    %65 = vector.extract_strided_slice %19 {offsets = [7, 0, 0], sizes = [1, 64, 128], strides = [1, 1, 1]} : vector<10x64x128xbf16> to vector<1x64x128xbf16>
    %66 = vector.shape_cast %65 : vector<1x64x128xbf16> to vector<64x128xbf16>
    %cst_24 = arith.constant dense<0.000000e+00> : vector<16x128xf32>
    %67 = tpu.matmul %64, %66, %cst_24 {dimension_numbers = #tpu.dot_dimension_numbers<[1], [0], [0], [1], [0, 0, 1, 1], [], []>} : vector<16x64xbf16>, vector<64x128xbf16>, vector<16x128xf32> -> vector<16x128xf32>
    %68 = arith.addf %62, %67 : vector<16x128xf32>
    %69 = vector.extract_strided_slice %18 {offsets = [8, 0, 0], sizes = [1, 16, 64], strides = [1, 1, 1]} : vector<10x16x64xbf16> to vector<1x16x64xbf16>
    %70 = vector.shape_cast %69 : vector<1x16x64xbf16> to vector<16x64xbf16>
    %71 = vector.extract_strided_slice %19 {offsets = [8, 0, 0], sizes = [1, 64, 128], strides = [1, 1, 1]} : vector<10x64x128xbf16> to vector<1x64x128xbf16>
    %72 = vector.shape_cast %71 : vector<1x64x128xbf16> to vector<64x128xbf16>
    %cst_25 = arith.constant dense<0.000000e+00> : vector<16x128xf32>
    %73 = tpu.matmul %70, %72, %cst_25 {dimension_numbers = #tpu.dot_dimension_numbers<[1], [0], [0], [1], [0, 0, 1, 1], [], []>} : vector<16x64xbf16>, vector<64x128xbf16>, vector<16x128xf32> -> vector<16x128xf32>
    %74 = arith.addf %68, %73 : vector<16x128xf32>
    %75 = vector.extract_strided_slice %18 {offsets = [9, 0, 0], sizes = [1, 16, 64], strides = [1, 1, 1]} : vector<10x16x64xbf16> to vector<1x16x64xbf16>
    %76 = vector.shape_cast %75 : vector<1x16x64xbf16> to vector<16x64xbf16>
    %77 = vector.extract_strided_slice %19 {offsets = [9, 0, 0], sizes = [1, 64, 128], strides = [1, 1, 1]} : vector<10x64x128xbf16> to vector<1x64x128xbf16>
    %78 = vector.shape_cast %77 : vector<1x64x128xbf16> to vector<64x128xbf16>
    %cst_26 = arith.constant dense<0.000000e+00> : vector<16x128xf32>
    %79 = tpu.matmul %76, %78, %cst_26 {dimension_numbers = #tpu.dot_dimension_numbers<[1], [0], [0], [1], [0, 0, 1, 1], [], []>} : vector<16x64xbf16>, vector<64x128xbf16>, vector<16x128xf32> -> vector<16x128xf32>
    %80 = arith.addf %74, %79 : vector<16x128xf32>
    %c0_27 = arith.constant 0 : index
    %c0_28 = arith.constant 0 : index
    %81 = vector.load %arg7[%c0_27, %c0_28] : memref<1x128xf32, #tpu.memory_space<vmem>>, vector<1x128xf32>
    %82 = vector.broadcast %81 : vector<1x128xf32> to vector<16x128xf32>
    %83 = arith.addf %80, %82 : vector<16x128xf32>
    %cst_29 = arith.constant 0.000000e+00 : f32
    %84 = vector.broadcast %cst_29 : f32 to vector<16x128xf32>
    %85 = arith.maximumf %83, %84 : vector<16x128xf32>
    %86 = arith.truncf %85 : vector<16x128xf32> to vector<16x128xbf16>
    %c0_30 = arith.constant 0 : index
    %c0_31 = arith.constant 0 : index
    %87 = vector.load %arg8[%c0_30, %c0_31] : memref<128x64xbf16, #tpu.memory_space<vmem>>, vector<128x64xbf16>
    %cst_32 = arith.constant dense<0.000000e+00> : vector<16x64xf32>
    %88 = tpu.matmul %86, %87, %cst_32 {dimension_numbers = #tpu.dot_dimension_numbers<[1], [0], [0], [1], [0, 0, 1, 1], [], []>} : vector<16x128xbf16>, vector<128x64xbf16>, vector<16x64xf32> -> vector<16x64xf32>
    %c0_33 = arith.constant 0 : index
    %c0_34 = arith.constant 0 : index
    %89 = vector.load %arg9[%c0_33, %c0_34] : memref<1x64xf32, #tpu.memory_space<vmem>>, vector<1x64xf32>
    %90 = vector.broadcast %89 : vector<1x64xf32> to vector<16x64xf32>
    %91 = arith.addf %88, %90 : vector<16x64xf32>
    %cst_35 = arith.constant 0.000000e+00 : f32
    %92 = vector.broadcast %cst_35 : f32 to vector<16x64xf32>
    %93 = arith.maximumf %91, %92 : vector<16x64xf32>
    %c0_36 = arith.constant 0 : index
    %c0_37 = arith.constant 0 : index
    %94 = vector.load %arg10[%c0_36, %c0_37] : memref<1x64xf32, #tpu.memory_space<vmem>>, vector<1x64xf32>
    %95 = vector.broadcast %94 : vector<1x64xf32> to vector<16x64xf32>
    %96 = arith.mulf %93, %95 : vector<16x64xf32>
    %cst_38 = arith.constant dense<0.000000e+00> : vector<16xf32>
    %97 = vector.multi_reduction <add>, %96, %cst_38 [1] : vector<16x64xf32> to vector<16xf32>
    %98 = vector.shape_cast %97 : vector<16xf32> to vector<16x1xf32>
    %c0_39 = arith.constant 0 : index
    %c0_40 = arith.constant 0 : index
    %99 = vector.load %arg11[%c0_39, %c0_40] : memref<1x1xf32, #tpu.memory_space<vmem>>, vector<1x1xf32>
    %100 = vector.broadcast %99 : vector<1x1xf32> to vector<16x1xf32>
    %101 = arith.addf %98, %100 : vector<16x1xf32>
    %c0_41 = arith.constant 0 : index
    %c0_42 = arith.constant 0 : index
    %102 = vector.load %arg12[%c0_41, %c0_42] : memref<16x1xf32, #tpu.memory_space<vmem>>, vector<16x1xf32>
    tpu.vector_store %arg12[%c0_41, %c0_42], %101 {strides = array<i32>} : memref<16x1xf32, #tpu.memory_space<vmem>>, vector<16x1xf32>,
    return
  }
  func.func @transform_0(%arg0: i32) -> (i32, i32, i32) {
    %c0_i32 = arith.constant 0 : i32
    %c0_i32_0 = arith.constant 0 : i32
    %c0_i32_1 = arith.constant 0 : i32
    return %c0_i32, %arg0, %c0_i32_0 : i32, i32, i32
  }
  func.func @transform_1(%arg0: i32) -> (i32, i32) {
    %c0_i32 = arith.constant 0 : i32
    %c0_i32_0 = arith.constant 0 : i32
    %c0_i32_1 = arith.constant 0 : i32
    return %c0_i32, %c0_i32_0 : i32, i32
  }
  func.func @transform_2(%arg0: i32) -> (i32, i32) {
    %c0_i32 = arith.constant 0 : i32
    %c0_i32_0 = arith.constant 0 : i32
    %c0_i32_1 = arith.constant 0 : i32
    return %c0_i32, %c0_i32_0 : i32, i32
  }
  func.func @transform_3(%arg0: i32) -> (i32, i32) {
    %c0_i32 = arith.constant 0 : i32
    %c0_i32_0 = arith.constant 0 : i32
    %c0_i32_1 = arith.constant 0 : i32
    return %c0_i32, %c0_i32_0 : i32, i32
  }
  func.func @transform_4(%arg0: i32) -> (i32, i32) {
    %c0_i32 = arith.constant 0 : i32
    %c0_i32_0 = arith.constant 0 : i32
    %c0_i32_1 = arith.constant 0 : i32
    return %c0_i32, %c0_i32_0 : i32, i32
  }
  func.func @transform_5(%arg0: i32) -> (i32, i32, i32) {
    %c0_i32 = arith.constant 0 : i32
    %c0_i32_0 = arith.constant 0 : i32
    %c0_i32_1 = arith.constant 0 : i32
    %c0_i32_2 = arith.constant 0 : i32
    return %c0_i32, %c0_i32_0, %c0_i32_1 : i32, i32, i32
  }
  func.func @transform_6(%arg0: i32) -> (i32, i32) {
    %c0_i32 = arith.constant 0 : i32
    %c0_i32_0 = arith.constant 0 : i32
    %c0_i32_1 = arith.constant 0 : i32
    return %c0_i32, %c0_i32_0 : i32, i32
  }
  func.func @transform_7(%arg0: i32) -> (i32, i32) {
    %c0_i32 = arith.constant 0 : i32
    %c0_i32_0 = arith.constant 0 : i32
    %c0_i32_1 = arith.constant 0 : i32
    return %c0_i32, %c0_i32_0 : i32, i32
  }
  func.func @transform_8(%arg0: i32) -> (i32, i32) {
    %c0_i32 = arith.constant 0 : i32
    %c0_i32_0 = arith.constant 0 : i32
    %c0_i32_1 = arith.constant 0 : i32
    return %c0_i32, %c0_i32_0 : i32, i32
  }
  func.func @transform_9(%arg0: i32) -> (i32, i32) {
    %c0_i32 = arith.constant 0 : i32
    %c0_i32_0 = arith.constant 0 : i32
    %c0_i32_1 = arith.constant 0 : i32
    return %c0_i32, %c0_i32_0 : i32, i32
  }
  func.func @transform_10(%arg0: i32) -> (i32, i32) {
    %c0_i32 = arith.constant 0 : i32
    %c0_i32_0 = arith.constant 0 : i32
    %c0_i32_1 = arith.constant 0 : i32
    return %c0_i32, %c0_i32_0 : i32, i32
  }
  func.func @transform_11(%arg0: i32) -> (i32, i32) {
    %c0_i32 = arith.constant 0 : i32
    %c0_i32_0 = arith.constant 0 : i32
    return %arg0, %c0_i32 : i32, i32
  }
}

</mosaic_0001>

<bundles_post_ra>
// kernel: cov1d_forward.1
= control target key start
LH: loop header
LB: loop body
LE: loop exit
PB: predicated region body
PF: predicated region fallthrough
CT: control target
= control target key end

     0   :  { %s1699_s0 = inlined_call_operand.vmem [shape: bf16[10,16,22], index: 0, kind: input, shape index: {}]   ;;  %s1700_s1 = inlined_call_operand.vmem [shape: bf16[22,32], index: 1, kind: input, shape index: {}]   ;;  %s1701_s2 = inlined_call_operand.vmem [shape: f32[1,32], index: 2, kind: input, shape index: {}]   ;;  %s1702_s3 = inlined_call_operand.vmem [shape: bf16[32,64], index: 3, kind: input, shape index: {}]   ;;  %s1703_s4 = inlined_call_operand.vmem [shape: f32[1,64], index: 4, kind: input, shape index: {}]   ;;  %s1704_s5 = inlined_call_operand.hbm [shape: bf16[10,64,128], index: 5, kind: input, shape index: {}]   ;;  %s1705_s6 = inlined_call_operand.vmem [shape: f32[1,128], index: 6, kind: input, shape index: {}]   ;;  %s1706_s7 = inlined_call_operand.vmem [shape: bf16[128,64], index: 7, kind: input, shape index: {}]   ;;  %s1707_s8 = inlined_call_operand.vmem [shape: f32[1,64], index: 8, kind: input, shape index: {}]   ;;  %s1708_s9 = inlined_call_operand.vmem [shape: f32[1,64], index: 9, kind: input, shape index: {}]   ;;  %s1709_s10 = inlined_call_operand.<no memory space> [shape: f32[1,1], index: 10, kind: input, shape index: {}]   ;;  %s1710_s11 = inlined_call_operand.vmem [shape: f32[16,1], index: 11, kind: output, shape index: {}]  }
   0x1   :  { %v16_v0 = vstv %s1709_s10 }
   0x2   :  { %17 = vst [vmem:[#allocation2] sm:$0x1] %v16_v0 }
   0x3   :  { %18 = vsyncpa [#allocation4], 0  ;;  %s33_s21 = sshll.u32 %s1704_s5, 4  ;;  %s1467_s22 = smov [#allocation3]   ;;  %s34_s21 = int_to_ptr.hbm [resolvable:$true] %s33_s21 }
   0x4   :  { %s35_s23 = sshll.u32 %s1467_s22, 4  ;;  %s1468_s24 = smov 64   ;;  %s36_s23 = int_to_ptr.vmem [resolvable:$true] %s35_s23 }
   0x5   :  { %s1469_s25 = smov 4  }
   0x6   :  { %41 = dma.hbm_to_vmem [thread:$0]  %s34_s21, 5120, %s36_s23, [#allocation4], %s1468_s24, %s1468_s24, %s1469_s25  }
   0x7   :  { %1465 = dma.done.wait [#allocation4], 5120  }
   0x8   :  { %1466 = vsyncadd [#allocation4], 4294962176  ;;  %v79_v1 = vld [vmem:[%s1700_s1 + $0x8] sm:$0x7]  ;;  %vm174_vm0 = vcmask 1042432   ;;  %v1377_v5 = vld [vmem:[%s1700_s1] sm:$0xff] }
   0x9   :  { %v139_v2 = vunpack.c.l.b16 %v79_v1  ;;  %v1367_v6 = vld [vmem:[%s1699_s0] sm:$0xff]  ;;  %vm143_vm1 = vcmask 179200   ;;  %v1368_v7 = vld [vmem:[%s1699_s0 + $0x8] sm:$0xff]  ;;  %v1369_v8 = vld [vmem:[%s1699_s0 + $0x10] sm:$0xff]  ;;  %vm287_vm2 = vcmask 261120   ;;  %vm526_vm3 = vcmask 523264  }
   0xa   :  { %v1370_v9 = vld [vmem:[%s1699_s0 + $0x18] sm:$0xff]  ;;  %v1371_v10 = vld [vmem:[%s1699_s0 + $0x20] sm:$0xff]  ;;  %v1376_v11 = vld [vmem:[%s1699_s0 + $0x48] sm:$0xff]  ;;  %vm1085_vm4 = vcmask 7168  }
   0xb   :  { %v141_v3 = vpack.c.b16 %v139_v2, %v139_v2  ;;  %v1372_v12 = vld [vmem:[%s1699_s0 + $0x28] sm:$0xff]  ;;  %v1373_v13 = vld [vmem:[%s1699_s0 + $0x30] sm:$0xff]  ;;  %v1378_v15 = vld [vmem:[%s1702_s3] sm:$0xff] }
   0xc   :  { %v1379_v14 = vld [vmem:[%s1702_s3 + $0x8] sm:$0xff]  ;;  %v1374_v16 = vld [vmem:[%s1699_s0 + $0x38] sm:$0xff]  ;;  %v1375_v17 = vld [vmem:[%s1699_s0 + $0x40] sm:$0xff] }
   0xd   :  { %v176_v4 = vsel %vm174_vm0, %v141_v3, 0  ;;  %324 = vmatpush.bf16.msra.mxu1 %v1379_v14  ;;  %v1590_v19 = vld [vmem:[%s1701_s2] ss:$0 sm:$0xff] }
   0xe   :  { %184 = vmatpush.bf16.msra.mxu0 %v176_v4  ;;  %1428 = vmatpush.bf16.msra.mxu3 %v176_v4 }
  0x11   :  { %325 = vmatpush.bf16.msra.mxu1 %v1378_v15 }
  0x12   :  { %185 = vmatpush.bf16.msra.mxu0 %v1377_v5  ;;  %1429 = vmatpush.bf16.msra.mxu3 %v1377_v5 }
  0x15   :  { %1137 = vmatmul.msk.bf16.vlgmr.msra.gmra.mxu0 %vm143_vm1, %v1367_v6  ;;  %1146 = vmatmul.msk.bf16.vlgmr.msra.gmra.mxu3 %vm143_vm1, %v1376_v11  ;;  %v1383_v11 = vld [vmem:[#allocation3 + $0x18] sm:$0xff] }
  0x16   :  { %1430 = vmatpush.bf16.msrb.mxu3 %v1379_v14  ;;  %v1381_v14 = vld [vmem:[#allocation3 + $0x8] sm:$0xff] }
  0x1a   :  { %1431 = vmatpush.bf16.msrb.mxu3 %v1378_v15 }
  0x1e   :  { %580 = vmatpush.bf16.msra.mxu3 %v1383_v11  ;;  %v1396_v11 = vld [vmem:[#allocation3 + $0x80] sm:$0xff] }
  0x25   :  { %1138 = vmatmul.msk.bf16.gmra.mxu0 %vm143_vm1, %v1368_v7 }
  0x35   :  { %1139 = vmatmul.msk.bf16.gmra.mxu0 %vm143_vm1, %v1369_v8 }
  0x45   :  { %1140 = vmatmul.msk.bf16.gmra.mxu0 %vm143_vm1, %v1370_v9 }
  0x55   :  { %1141 = vmatmul.msk.bf16.gmra.mxu0 %vm143_vm1, %v1371_v10 }
  0x65   :  { %1142 = vmatmul.msk.bf16.gmra.mxu0 %vm143_vm1, %v1372_v12 }
  0x75   :  { %1143 = vmatmul.msk.bf16.gmra.mxu0 %vm143_vm1, %v1373_v13  ;;  %v1382_v13 = vld [vmem:[#allocation3 + $0x10] sm:$0xff] }
  0x76   :  { %581 = vmatpush.bf16.msra.mxu3 %v1382_v13 }
  0x7a   :  { %582 = vmatpush.bf16.msra.mxu3 %v1381_v14 }
  0x85   :  { %1144 = vmatmul.msk.bf16.gmra.mxu0 %vm143_vm1, %v1374_v16 }
  0x92   :  { %v187_v18 = vpop.f32.mrf.mxu0 }
  0x93   :  { %v188_v20 = vadd.f32 %v1590_v19, %v187_v18  ;;  %v1380_v18 = vld [vmem:[#allocation3] sm:$0xff] }
  0x94   :  { %583 = vmatpush.bf16.msra.mxu3 %v1380_v18  ;;  %v1402_v18 = vld [vmem:[#allocation3 + $0xb0] sm:$0xff] }
  0x95   :  { %1145 = vmatmul.msk.bf16.gmra.mxu0 %vm143_vm1, %v1375_v17  ;;  %v237_v23 = vmax.f32 %v188_v20, 0.0 }
  0x98   :  { %v232_v53 = vpop.f32.mrf.mxu3 }
  0x99   :  { %v233_v56 = vadd.f32 %v1590_v19, %v232_v53 }
  0x9a   :  { %v189_v21 = vpop.f32.mrf.mxu0 }
  0x9b   :  { %v190_v22 = vadd.f32 %v1590_v19, %v189_v21  ;;  %v255_v58 = vmax.f32 %v233_v56, 0.0  ;;  %v1393_v56 = vld [vmem:[#allocation3 + $0x68] sm:$0xff] }
  0x9d   :  { %v238_v24 = vmax.f32 %v190_v22, 0.0 }
  0x9f   :  { %v257_v25 = vpack.c.bf16 %v238_v24, %v237_v23  ;;  %v1387_v23 = vld [vmem:[#allocation3 + $0x38] sm:$0xff] }
  0xa0   :  { %v234_v57 = vpop.f32.mrf.mxu3  ;;  %534 = vmatpush.bf16.msra.mxu2 %v1387_v23  ;;  %v1401_v23 = vld [vmem:[#allocation3 + $0xa8] sm:$0xff] }
  0xa1   :  { %1155 = vmatmul.msk.bf16.vlgmr.msra.gmra.mxu1 %vm287_vm2, %v257_v25  ;;  %v235_v59 = vadd.f32 %v1590_v19, %v234_v57  ;;  %v1386_v25 = vld [vmem:[#allocation3 + $0x30] sm:$0xff] }
  0xa2   :  { %v192_v26 = vpop.f32.mrf.mxu0 }
  0xa3   :  { %v193_v27 = vadd.f32 %v1590_v19, %v192_v26  ;;  %v256_v61 = vmax.f32 %v235_v59, 0.0  ;;  %v1385_v26 = vld [vmem:[#allocation3 + $0x28] sm:$0xff] }
  0xa4   :  { %535 = vmatpush.bf16.msra.mxu2 %v1386_v25 }
  0xa5   :  { %v239_v30 = vmax.f32 %v193_v27, 0.0  ;;  %v266_v0 = vpack.c.bf16 %v256_v61, %v255_v58 }
  0xa7   :  { %1164 = vmatmul.msk.bf16.vlgmr.msrb.gmra.mxu3 %vm287_vm2, %v266_v0 }
  0xa8   :  { %536 = vmatpush.bf16.msra.mxu2 %v1385_v26 }
  0xaa   :  { %v194_v28 = vpop.f32.mrf.mxu0 }
  0xab   :  { %v195_v29 = vadd.f32 %v1590_v19, %v194_v28 }
  0xad   :  { %v240_v31 = vmax.f32 %v195_v29, 0.0 }
  0xaf   :  { %v258_v32 = vpack.c.bf16 %v240_v31, %v239_v30  ;;  %v1384_v30 = vld [vmem:[#allocation3 + $0x20] sm:$0xff] }
  0xb0   :  { %537 = vmatpush.bf16.msra.mxu2 %v1384_v30 }
  0xb1   :  { %1156 = vmatmul.msk.bf16.gmra.mxu1 %vm287_vm2, %v258_v32 }
  0xb2   :  { %v197_v33 = vpop.f32.mrf.mxu0 }
  0xb3   :  { %v198_v34 = vadd.f32 %v1590_v19, %v197_v33  ;;  %v1625_v33 = vld [vmem:[%s1703_s4] ss:$0 sm:$0xff] }
  0xb5   :  { %v241_v37 = vmax.f32 %v198_v34, 0.0 }
  0xba   :  { %v199_v35 = vpop.f32.mrf.mxu0 }
  0xbb   :  { %v200_v36 = vadd.f32 %v1590_v19, %v199_v35 }
  0xbd   :  { %v242_v38 = vmax.f32 %v200_v36, 0.0  ;;  %v1391_v36 = vld [vmem:[#allocation3 + $0x58] sm:$0xff] }
  0xbe   :  { %626 = vmatpush.bf16.msrb.mxu2 %v1391_v36 }
  0xbf   :  { %v259_v39 = vpack.c.bf16 %v242_v38, %v241_v37  ;;  %v1390_v38 = vld [vmem:[#allocation3 + $0x50] sm:$0xff] }
  0xc1   :  { %1157 = vmatmul.msk.bf16.gmra.mxu1 %vm287_vm2, %v259_v39 }
  0xc2   :  { %v202_v40 = vpop.f32.mrf.mxu0  ;;  %627 = vmatpush.bf16.msrb.mxu2 %v1390_v38 }
  0xc3   :  { %v203_v41 = vadd.f32 %v1590_v19, %v202_v40 }
  0xc5   :  { %v243_v44 = vmax.f32 %v203_v41, 0.0  ;;  %v1389_v41 = vld [vmem:[#allocation3 + $0x48] sm:$0xff] }
  0xc6   :  { %628 = vmatpush.bf16.msrb.mxu2 %v1389_v41 }
  0xca   :  { %v204_v42 = vpop.f32.mrf.mxu0 }
  0xcb   :  { %v205_v43 = vadd.f32 %v1590_v19, %v204_v42 }
  0xcd   :  { %v244_v45 = vmax.f32 %v205_v43, 0.0 }
  0xcf   :  { %v260_v46 = vpack.c.bf16 %v244_v45, %v243_v44  ;;  %v1388_v45 = vld [vmem:[#allocation3 + $0x40] sm:$0xff] }
  0xd0   :  { %629 = vmatpush.bf16.msrb.mxu2 %v1388_v45 }
  0xd1   :  { %1158 = vmatmul.msk.bf16.gmra.mxu1 %vm287_vm2, %v260_v46 }
  0xd2   :  { %v207_v47 = vpop.f32.mrf.mxu0 }
  0xd3   :  { %v208_v48 = vadd.f32 %v1590_v19, %v207_v47 }
  0xd5   :  { %v245_v51 = vmax.f32 %v208_v48, 0.0 }
  0xda   :  { %v209_v49 = vpop.f32.mrf.mxu0 }
  0xdb   :  { %v210_v50 = vadd.f32 %v1590_v19, %v209_v49 }
  0xdd   :  { %v246_v52 = vmax.f32 %v210_v50, 0.0  ;;  %v1395_v50 = vld [vmem:[#allocation3 + $0x78] sm:$0xff] }
  0xde   :  { %674 = vmatpush.bf16.msrb.mxu3 %v1395_v50 }
  0xdf   :  { %v261_v54 = vpack.c.bf16 %v246_v52, %v245_v51  ;;  %v1394_v52 = vld [vmem:[#allocation3 + $0x70] sm:$0xff] }
  0xe1   :  { %1159 = vmatmul.msk.bf16.gmra.mxu1 %vm287_vm2, %v261_v54 }
  0xe2   :  { %v212_v55 = vpop.f32.mrf.mxu0  ;;  %675 = vmatpush.bf16.msrb.mxu3 %v1394_v52 }
  0xe3   :  { %v213_v60 = vadd.f32 %v1590_v19, %v212_v55 }
  0xe5   :  { %v247_v1 = vmax.f32 %v213_v60, 0.0  ;;  %v1392_v60 = vld [vmem:[#allocation3 + $0x60] sm:$0xff] }
  0xe6   :  { %676 = vmatpush.bf16.msrb.mxu3 %v1393_v56 }
  0xea   :  { %v214_v62 = vpop.f32.mrf.mxu0  ;;  %677 = vmatpush.bf16.msrb.mxu3 %v1392_v60 }
  0xeb   :  { %v215_v63 = vadd.f32 %v1590_v19, %v214_v62 }
  0xed   :  { %v248_v2 = vmax.f32 %v215_v63, 0.0 }
  0xef   :  { %v262_v3 = vpack.c.bf16 %v248_v2, %v247_v1  ;;  %v1399_v1 = vld [vmem:[#allocation3 + $0x98] sm:$0xff] }
  0xf1   :  { %1160 = vmatmul.msk.bf16.gmra.mxu1 %vm287_vm2, %v262_v3  ;;  %v1398_v3 = vld [vmem:[#allocation3 + $0x90] sm:$0xff] }
  0xf2   :  { %v217_v4 = vpop.f32.mrf.mxu0 }
  0xf3   :  { %v218_v5 = vadd.f32 %v1590_v19, %v217_v4 }
  0xf5   :  { %v249_v8 = vmax.f32 %v218_v5, 0.0 }
  0xfa   :  { %v219_v6 = vpop.f32.mrf.mxu0 }
  0xfb   :  { %v220_v7 = vadd.f32 %v1590_v19, %v219_v6 }
  0xfd   :  { %v250_v9 = vmax.f32 %v220_v7, 0.0  ;;  %v1397_v7 = vld [vmem:[#allocation3 + $0x88] sm:$0xff] }
  0xff   :  { %v263_v10 = vpack.c.bf16 %v250_v9, %v249_v8 }
 0x101   :  { %1161 = vmatmul.msk.bf16.gmra.mxu1 %vm287_vm2, %v263_v10 }
 0x102   :  { %v222_v12 = vpop.f32.mrf.mxu0 }
 0x103   :  { %v223_v15 = vadd.f32 %v1590_v19, %v222_v12 }
 0x105   :  { %v251_v20 = vmax.f32 %v223_v15, 0.0 }
 0x10a   :  { %v224_v16 = vpop.f32.mrf.mxu0 }
 0x10b   :  { %v225_v17 = vadd.f32 %v1590_v19, %v224_v16  ;;  %v1403_v16 = vld [vmem:[#allocation3 + $0xb8] sm:$0xff] }
 0x10d   :  { %v252_v21 = vmax.f32 %v225_v17, 0.0 }
 0x10f   :  { %v264_v22 = vpack.c.bf16 %v252_v21, %v251_v20 }
 0x111   :  { %1162 = vmatmul.msk.bf16.gmra.mxu1 %vm287_vm2, %v264_v22 }
 0x112   :  { %v227_v24 = vpop.f32.mrf.mxu0 }
 0x113   :  { %v228_v27 = vadd.f32 %v1590_v19, %v227_v24 }
 0x115   :  { %v253_v31 = vmax.f32 %v228_v27, 0.0  ;;  %v1400_v27 = vld [vmem:[#allocation3 + $0xa0] sm:$0xff] }
 0x11a   :  { %v229_v28 = vpop.f32.mrf.mxu0 }
 0x11b   :  { %v230_v29 = vadd.f32 %v1590_v19, %v229_v28 }
 0x11d   :  { %v254_v32 = vmax.f32 %v230_v29, 0.0 }
 0x11e   :  { %v327_v34 = vpop.f32.mrf.mxu1 }
 0x11f   :  { %v265_v35 = vpack.c.bf16 %v254_v32, %v253_v31  ;;  %v328_v37 = vadd.f32 %v1625_v33, %v327_v34  ;;  %v1407_v32 = vld [vmem:[#allocation3 + $0xd8] sm:$0xff] }
 0x121   :  { %1163 = vmatmul.msk.bf16.gmra.mxu1 %vm287_vm2, %v265_v35  ;;  %v377_v39 = vmax.f32 %v328_v37, 0.0  ;;  %v1406_v35 = vld [vmem:[#allocation3 + $0xd0] sm:$0xff] }
 0x123   :  { %v397_v42 = vpack.c.bf16 %v377_v39, %v377_v39  ;;  %v1405_v39 = vld [vmem:[#allocation3 + $0xc8] sm:$0xff] }
 0x125   :  { %v546_v46 = vunpack.c.l.b16 %v397_v42  ;;  %v1404_v42 = vld [vmem:[#allocation3 + $0xc0] sm:$0xff] }
 0x126   :  { %v329_v19 = vpop.f32.mrf.mxu1 }
 0x127   :  { %v330_v40 = vadd.f32 %v1625_v33, %v329_v19 }
 0x129   :  { %v378_v43 = vmax.f32 %v330_v40, 0.0 }
 0x12b   :  { %v398_v44 = vpack.c.bf16 %v378_v43, %v378_v43 }
 0x12d   :  { %v547_v47 = vunpack.c.l.b16 %v398_v44 }
 0x12e   :  { %v332_v48 = vpop.f32.mrf.mxu1 }
 0x12f   :  { %v548_v49 = vpack.c.b16 %v547_v47, %v546_v46  ;;  %v333_v51 = vadd.f32 %v1625_v33, %v332_v48  ;;  %v1411_v47 = vld [vmem:[#allocation3 + $0xf8] sm:$0xff] }
 0x131   :  { %1198 = vmatmul.msk.bf16.vlgmr.msra.gmra.mxu3 %vm526_vm3, %v548_v49  ;;  %v379_v53 = vmax.f32 %v333_v51, 0.0  ;;  %v1410_v49 = vld [vmem:[#allocation3 + $0xf0] sm:$0xff] }
 0x132   :  { %770 = vmatpush.bf16.msra.mxu3 %v1403_v16 }
 0x133   :  { %v399_v57 = vpack.c.bf16 %v379_v53, %v379_v53  ;;  %v1409_v53 = vld [vmem:[#allocation3 + $0xe8] sm:$0xff] }
 0x135   :  { %v499_v61 = vunpack.c.l.b16 %v399_v57  ;;  %v1408_v57 = vld [vmem:[#allocation3 + $0xe0] sm:$0xff] }
 0x136   :  { %v334_v54 = vpop.f32.mrf.mxu1  ;;  %771 = vmatpush.bf16.msra.mxu3 %v1402_v18  ;;  %v372_v18 = vpop.f32.mrf.mxu3 }
 0x137   :  { %v335_v55 = vadd.f32 %v1625_v33, %v334_v54 }
 0x139   :  { %v380_v58 = vmax.f32 %v335_v55, 0.0 }
 0x13a   :  { %772 = vmatpush.bf16.msra.mxu3 %v1401_v23 }
 0x13b   :  { %v400_v59 = vpack.c.bf16 %v380_v58, %v380_v58 }
 0x13d   :  { %v500_v62 = vunpack.c.l.b16 %v400_v59 }
 0x13e   :  { %v337_v63 = vpop.f32.mrf.mxu1  ;;  %773 = vmatpush.bf16.msra.mxu3 %v1400_v27 }
 0x13f   :  { %v501_v0 = vpack.c.b16 %v500_v62, %v499_v61  ;;  %v338_v2 = vadd.f32 %v1625_v33, %v337_v63  ;;  %v1415_v62 = vld [vmem:[#allocation3 + $0x118] sm:$0xff] }
 0x140   :  { %v1419_v63 = vld [vmem:[#allocation3 + $0x138] sm:$0xff] }
 0x141   :  { %1181 = vmatmul.msk.bf16.vlgmr.msra.gmra.mxu2 %vm526_vm3, %v501_v0  ;;  %v381_v4 = vmax.f32 %v338_v2, 0.0  ;;  %v1418_v2 = vld [vmem:[#allocation3 + $0x130] sm:$0xff] }
 0x142   :  { %722 = vmatpush.bf16.msra.mxu2 %v1399_v1  ;;  %v1414_v1 = vld [vmem:[#allocation3 + $0x110] sm:$0xff] }
 0x143   :  { %v401_v8 = vpack.c.bf16 %v381_v4, %v381_v4 }
 0x145   :  { %v592_v12 = vunpack.c.l.b16 %v401_v8 }
 0x146   :  { %v339_v5 = vpop.f32.mrf.mxu1  ;;  %723 = vmatpush.bf16.msra.mxu2 %v1398_v3 }
 0x147   :  { %v340_v6 = vadd.f32 %v1625_v33, %v339_v5 }
 0x149   :  { %v382_v9 = vmax.f32 %v340_v6, 0.0  ;;  %v1413_v6 = vld [vmem:[#allocation3 + $0x108] sm:$0xff] }
 0x14a   :  { %724 = vmatpush.bf16.msra.mxu2 %v1397_v7  ;;  %v1417_v7 = vld [vmem:[#allocation3 + $0x128] sm:$0xff] }
 0x14b   :  { %v402_v10 = vpack.c.bf16 %v382_v9, %v382_v9 }
 0x14d   :  { %v593_v13 = vunpack.c.l.b16 %v402_v10 }
 0x14e   :  { %v342_v14 = vpop.f32.mrf.mxu1  ;;  %725 = vmatpush.bf16.msra.mxu2 %v1396_v11  ;;  %v1412_v11 = vld [vmem:[#allocation3 + $0x100] sm:$0xff] }
 0x14f   :  { %v594_v15 = vpack.c.b16 %v593_v13, %v592_v12  ;;  %v343_v17 = vadd.f32 %v1625_v33, %v342_v14  ;;  %v1416_v12 = vld [vmem:[#allocation3 + $0x120] sm:$0xff] }
 0x151   :  { %1215 = vmatmul.msk.bf16.vlgmr.msrb.gmra.mxu2 %vm526_vm3, %v594_v15  ;;  %v383_v20 = vmax.f32 %v343_v17, 0.0 }
 0x152   :  { %818 = vmatpush.bf16.msrb.mxu2 %v1407_v32 }
 0x153   :  { %v403_v24 = vpack.c.bf16 %v383_v20, %v383_v20 }
 0x155   :  { %v640_v28 = vunpack.c.l.b16 %v403_v24 }
 0x156   :  { %v344_v21 = vpop.f32.mrf.mxu1  ;;  %819 = vmatpush.bf16.msrb.mxu2 %v1406_v35 }
 0x157   :  { %v345_v22 = vadd.f32 %v1625_v33, %v344_v21 }
 0x159   :  { %v384_v25 = vmax.f32 %v345_v22, 0.0 }
 0x15a   :  { %820 = vmatpush.bf16.msrb.mxu2 %v1405_v39 }
 0x15b   :  { %v404_v26 = vpack.c.bf16 %v384_v25, %v384_v25 }
 0x15d   :  { %v641_v29 = vunpack.c.l.b16 %v404_v26  ;;  %v374_v26 = vpop.f32.mrf.mxu3 }
 0x15e   :  { %v347_v30 = vpop.f32.mrf.mxu1  ;;  %821 = vmatpush.bf16.msrb.mxu2 %v1404_v42  ;;  %v375_v32 = vadd.f32 %v1625_v33, %v374_v26 }
 0x15f   :  { %v642_v31 = vpack.c.b16 %v641_v29, %v640_v28  ;;  %v348_v34 = vadd.f32 %v1625_v33, %v347_v30  ;;  %v373_v30 = vadd.f32 %v1625_v33, %v372_v18 }
 0x161   :  { %1232 = vmatmul.msk.bf16.vlgmr.msrb.gmra.mxu3 %vm526_vm3, %v642_v31  ;;  %v385_v36 = vmax.f32 %v348_v34, 0.0  ;;  %v395_v35 = vmax.f32 %v373_v30, 0.0 }
 0x162   :  { %866 = vmatpush.bf16.msrb.mxu3 %v1411_v47 }
 0x163   :  { %v405_v19 = vpack.c.bf16 %v385_v36, %v385_v36  ;;  %v396_v36 = vmax.f32 %v375_v32, 0.0  ;;  %v415_v39 = vpack.c.bf16 %v395_v35, %v395_v35 }
 0x165   :  { %v688_v43 = vunpack.c.l.b16 %v405_v19  ;;  %v416_v19 = vpack.c.bf16 %v396_v36, %v396_v36 }
 0x166   :  { %v349_v37 = vpop.f32.mrf.mxu1  ;;  %867 = vmatpush.bf16.msrb.mxu3 %v1410_v49 }
 0x167   :  { %v350_v38 = vadd.f32 %v1625_v33, %v349_v37 }
 0x169   :  { %v386_v40 = vmax.f32 %v350_v38, 0.0 }
 0x16a   :  { %868 = vmatpush.bf16.msrb.mxu3 %v1409_v53 }
 0x16b   :  { %v406_v41 = vpack.c.bf16 %v386_v40, %v386_v40 }
 0x16d   :  { %v689_v44 = vunpack.c.l.b16 %v406_v41 }
 0x16e   :  { %v352_v45 = vpop.f32.mrf.mxu1  ;;  %869 = vmatpush.bf16.msrb.mxu3 %v1408_v57 }
 0x16f   :  { %v690_v46 = vpack.c.b16 %v689_v44, %v688_v43  ;;  %v353_v48 = vadd.f32 %v1625_v33, %v352_v45  ;;  %v928_v43 = vunpack.c.l.b16 %v415_v39  ;;  %v929_v44 = vunpack.c.l.b16 %v416_v19  ;;  %v1438_v39 = vld [vmem:[%s1707_s8] ss:$0 sm:$0xff] }
 0x171   :  { %1249 = vmatmul.msk.bf16.vlgmr.msra.gmra.mxu2 %vm526_vm3, %v690_v46  ;;  %v387_v50 = vmax.f32 %v353_v48, 0.0  ;;  %v930_v48 = vpack.c.b16 %v929_v44, %v928_v43 }
 0x172   :  { %914 = vmatpush.bf16.msra.mxu2 %v1415_v62  ;;  %v1424_v62 = vld [vmem:[%s1706_s7 + $0x20] sm:$0xff] }
 0x173   :  { %v407_v54 = vpack.c.bf16 %v387_v50, %v387_v50 }
 0x175   :  { %v736_v58 = vunpack.c.l.b16 %v407_v54 }
 0x176   :  { %v354_v51 = vpop.f32.mrf.mxu1  ;;  %915 = vmatpush.bf16.msra.mxu2 %v1414_v1  ;;  %v1422_v1 = vld [vmem:[%s1706_s7 + $0x10] sm:$0xff] }
 0x177   :  { %v355_v52 = vadd.f32 %v1625_v33, %v354_v51 }
 0x179   :  { %v388_v55 = vmax.f32 %v355_v52, 0.0 }
 0x17a   :  { %916 = vmatpush.bf16.msra.mxu2 %v1413_v6 }
 0x17b   :  { %v408_v56 = vpack.c.bf16 %v388_v55, %v388_v55 }
 0x17d   :  { %v737_v59 = vunpack.c.l.b16 %v408_v56 }
 0x17e   :  { %v357_v60 = vpop.f32.mrf.mxu1  ;;  %917 = vmatpush.bf16.msra.mxu2 %v1412_v11 }
 0x17f   :  { %v738_v61 = vpack.c.b16 %v737_v59, %v736_v58  ;;  %v358_v0 = vadd.f32 %v1625_v33, %v357_v60  ;;  %v1426_v58 = vld [vmem:[%s1706_s7 + $0x30] sm:$0xff]  ;;  %v1425_v59 = vld [vmem:[%s1706_s7 + $0x28] sm:$0xff] }
 0x181   :  { %1266 = vmatmul.msk.bf16.vlgmr.msra.gmra.mxu3 %vm526_vm3, %v738_v61  ;;  %v389_v3 = vmax.f32 %v358_v0, 0.0 }
 0x182   :  { %962 = vmatpush.bf16.msra.mxu3 %v1419_v63  ;;  %v1423_v63 = vld [vmem:[%s1706_s7 + $0x18] sm:$0xff] }
 0x183   :  { %v409_v8 = vpack.c.bf16 %v389_v3, %v389_v3  ;;  %v1421_v3 = vld [vmem:[%s1706_s7 + $0x8] sm:$0xff] }
 0x185   :  { %v784_v13 = vunpack.c.l.b16 %v409_v8 }
 0x186   :  { %v359_v4 = vpop.f32.mrf.mxu1  ;;  %963 = vmatpush.bf16.msra.mxu3 %v1418_v2 }
 0x187   :  { %v360_v5 = vadd.f32 %v1625_v33, %v359_v4 }
 0x189   :  { %v390_v9 = vmax.f32 %v360_v5, 0.0  ;;  %v1420_v5 = vld [vmem:[%s1706_s7] sm:$0xff] }
 0x18a   :  { %964 = vmatpush.bf16.msra.mxu3 %v1417_v7 }
 0x18b   :  { %v410_v10 = vpack.c.bf16 %v390_v9, %v390_v9 }
 0x18d   :  { %v785_v14 = vunpack.c.l.b16 %v410_v10 }
 0x18e   :  { %v362_v15 = vpop.f32.mrf.mxu1  ;;  %965 = vmatpush.bf16.msra.mxu3 %v1416_v12 }
 0x18f   :  { %v786_v16 = vpack.c.b16 %v785_v14, %v784_v13  ;;  %v363_v17 = vadd.f32 %v1625_v33, %v362_v15 }
 0x191   :  { %1283 = vmatmul.msk.bf16.vlgmr.msrb.gmra.mxu2 %vm526_vm3, %v786_v16  ;;  %v391_v20 = vmax.f32 %v363_v17, 0.0 }
 0x193   :  { %v411_v23 = vpack.c.bf16 %v391_v20, %v391_v20 }
 0x195   :  { %v832_v27 = vunpack.c.l.b16 %v411_v23 }
 0x196   :  { %v364_v21 = vpop.f32.mrf.mxu1 }
 0x197   :  { %v365_v22 = vadd.f32 %v1625_v33, %v364_v21 }
 0x199   :  { %v392_v24 = vmax.f32 %v365_v22, 0.0 }
 0x19b   :  { %v412_v25 = vpack.c.bf16 %v392_v24, %v392_v24 }
 0x19d   :  { %v833_v28 = vunpack.c.l.b16 %v412_v25 }
 0x19e   :  { %v367_v29 = vpop.f32.mrf.mxu1 }
 0x19f   :  { %v834_v31 = vpack.c.b16 %v833_v28, %v832_v27  ;;  %v368_v34 = vadd.f32 %v1625_v33, %v367_v29  ;;  %v1437_v28 = vld [vmem:[%s1705_s6] ss:$0 sm:$0xff] }
 0x1a1   :  { %1300 = vmatmul.msk.bf16.vlgmr.msrb.gmra.mxu3 %vm526_vm3, %v834_v31  ;;  %v393_v37 = vmax.f32 %v368_v34, 0.0 }
 0x1a3   :  { %v413_v41 = vpack.c.bf16 %v393_v37, %v393_v37 }
 0x1a5   :  { %v880_v46 = vunpack.c.l.b16 %v413_v41  ;;  %v1439_v41 = vld [vmem:[%s1708_s9] ss:$0 sm:$0xff] }
 0x1a6   :  { %v369_v38 = vpop.f32.mrf.mxu1 }
 0x1a7   :  { %v370_v40 = vadd.f32 %v1625_v33, %v369_v38  ;;  %v1427_v33 = vld [vmem:[%s1706_s7 + $0x38] sm:$0xff] }
 0x1a8   :  { %1051 = vmatpush.bf16.msrb.mxu2 %v1427_v33 }
 0x1a9   :  { %v394_v42 = vmax.f32 %v370_v40, 0.0 }
 0x1ab   :  { %v414_v45 = vpack.c.bf16 %v394_v42, %v394_v42 }
 0x1ac   :  { %1052 = vmatpush.bf16.msrb.mxu2 %v1426_v58 }
 0x1ad   :  { %v881_v47 = vunpack.c.l.b16 %v414_v45 }
 0x1af   :  { %v882_v49 = vpack.c.b16 %v881_v47, %v880_v46 }
 0x1b0   :  { %1053 = vmatpush.bf16.msrb.mxu2 %v1425_v59 }
 0x1b1   :  { %1317 = vmatmul.msk.bf16.vlgmr.msra.gmra.mxu2 %vm526_vm3, %v882_v49  ;;  %1334 = vmatmul.msk.bf16.vlgmr.msra.gmra.mxu3 %vm526_vm3, %v930_v48 }
 0x1b4   :  { %v585_v51 = vpop.f32.mrf.mxu3  ;;  %1054 = vmatpush.bf16.msrb.mxu2 %v1424_v62 }
 0x1b8   :  { %1055 = vmatpush.bf16.msrb.mxu2 %v1423_v63 }
 0x1bc   :  { %v587_v53 = vpop.f32.mrf.mxu3  ;;  %1056 = vmatpush.bf16.msrb.mxu2 %v1422_v1 }
 0x1c0   :  { %1057 = vmatpush.bf16.msrb.mxu2 %v1421_v3 }
 0x1c4   :  { %v539_v50 = vpop.f32.mrf.mxu2  ;;  %1058 = vmatpush.bf16.msrb.mxu2 %v1420_v5 }
 0x1c5   :  { %v586_v7 = vadd.f32 %v585_v51, %v539_v50  ;;  %v1440_v50 = vld [vmem:[#allocation2] ss:$0 sm:$0xff] }
 0x1cc   :  { %v541_v52 = vpop.f32.mrf.mxu2 }
 0x1cd   :  { %v588_v12 = vadd.f32 %v587_v53, %v541_v52 }
 0x1d4   :  { %v631_v54 = vpop.f32.mrf.mxu2 }
 0x1d5   :  { %v636_v8 = vadd.f32 %v631_v54, %v586_v7 }
 0x1dc   :  { %v633_v56 = vpop.f32.mrf.mxu2 }
 0x1dd   :  { %v637_v14 = vadd.f32 %v633_v56, %v588_v12 }
 0x1e4   :  { %v679_v55 = vpop.f32.mrf.mxu3 }
 0x1e5   :  { %v684_v11 = vadd.f32 %v679_v55, %v636_v8 }
 0x1ec   :  { %v681_v57 = vpop.f32.mrf.mxu3 }
 0x1ed   :  { %v685_v16 = vadd.f32 %v681_v57, %v637_v14 }
 0x1f4   :  { %v727_v60 = vpop.f32.mrf.mxu2 }
 0x1f5   :  { %v732_v13 = vadd.f32 %v727_v60, %v684_v11 }
 0x1fc   :  { %v729_v0 = vpop.f32.mrf.mxu2 }
 0x1fd   :  { %v733_v21 = vadd.f32 %v729_v0, %v685_v16 }
 0x204   :  { %v775_v61 = vpop.f32.mrf.mxu3 }
 0x205   :  { %v780_v15 = vadd.f32 %v775_v61, %v732_v13 }
 0x20c   :  { %v777_v2 = vpop.f32.mrf.mxu3 }
 0x20d   :  { %v781_v23 = vadd.f32 %v777_v2, %v733_v21 }
 0x214   :  { %v823_v4 = vpop.f32.mrf.mxu2 }
 0x215   :  { %v828_v17 = vadd.f32 %v823_v4, %v780_v15 }
 0x21c   :  { %v825_v9 = vpop.f32.mrf.mxu2 }
 0x21d   :  { %v829_v25 = vadd.f32 %v825_v9, %v781_v23 }
 0x224   :  { %v871_v6 = vpop.f32.mrf.mxu3 }
 0x225   :  { %v876_v22 = vadd.f32 %v871_v6, %v828_v17 }
 0x22c   :  { %v873_v10 = vpop.f32.mrf.mxu3 }
 0x22d   :  { %v877_v26 = vadd.f32 %v873_v10, %v829_v25 }
 0x234   :  { %v919_v18 = vpop.f32.mrf.mxu2  ;;  %v967_v20 = vpop.f32.mrf.mxu3 }
 0x235   :  { %v924_v24 = vadd.f32 %v919_v18, %v876_v22 }
 0x237   :  { %v972_v27 = vadd.f32 %v967_v20, %v924_v24 }
 0x239   :  { %v978_v32 = vadd.f32 %v1437_v28, %v972_v27 }
 0x23b   :  { %v980_v36 = vmax.f32 %v978_v32, 0.0 }
 0x23c   :  { %v921_v29 = vpop.f32.mrf.mxu2  ;;  %v969_v31 = vpop.f32.mrf.mxu3 }
 0x23d   :  { %v925_v30 = vadd.f32 %v921_v29, %v877_v26 }
 0x23f   :  { %v973_v34 = vadd.f32 %v969_v31, %v925_v30 }
 0x241   :  { %v979_v35 = vadd.f32 %v1437_v28, %v973_v34 }
 0x243   :  { %v981_v37 = vmax.f32 %v979_v35, 0.0 }
 0x245   :  { %v982_v38 = vpack.c.bf16 %v981_v37, %v980_v36 }
 0x247   :  { %1059 = vmatmul.bf16.vlgmr.msrb.gmra.mxu2 %v982_v38 }
 0x2ca   :  { %v1060_v19 = vpop.f32.mrf.mxu2 }
 0x2cb   :  { %v1061_v40 = vadd.f32 %v1438_v39, %v1060_v19 }
 0x2cd   :  { %v1065_v42 = vmax.f32 %v1061_v40, 0.0 }
 0x2cf   :  { %v1071_v43 = vmul.f32 %v1439_v41, %v1065_v42 }
 0x2d1   :  { %v1073_v44 = vsel %vm526_vm3, %v1071_v43, 0.0 }
 0x2d2   :  { %v1062_v45 = vpop.f32.mrf.mxu2  ;;  %1074 = vadd.xlane.f32.xlu0 %v1073_v44 }
 0x2d3   :  { %v1063_v46 = vadd.f32 %v1438_v39, %v1062_v45 }
 0x2d5   :  { %v1066_v47 = vmax.f32 %v1063_v46, 0.0 }
 0x2d7   :  { %v1072_v48 = vmul.f32 %v1439_v41, %v1066_v47 }
 0x2d9   :  { %v1076_v49 = vsel %vm526_vm3, %v1072_v48, 0.0 }
 0x2da   :  { %1077 = vadd.xlane.f32.xlu0 %v1076_v49 }
 0x345   :  { %v1075_v51 = vpop.xlane.xlu0 %1074 }
 0x346   :  { %v1083_v52 = vadd.f32 %v1440_v50, %v1075_v51 }
 0x348   :  { %1086 = vst.msk [vmem:[%s1710_s11] sm:$0xff] %vm1085_vm4, %v1083_v52 }
 0x34d   :  { %v1078_v53 = vpop.xlane.xlu0 %1077 }
 0x34e   :  { %v1084_v54 = vadd.f32 %v1440_v50, %v1078_v53 }
 0x350   :  { %1087 = vst.msk [vmem:[%s1710_s11 + $0x8] sm:$0xff] %vm1085_vm4, %v1084_v54 }
 0x351   :  { %1092 = vsyncpa [#allocation4], 1 }

</bundles_post_ra>
